<compile_context>
chip_gen: v5e
topology: v5e:2x2
jax: 0.10.0
libtpu: 0.0.40
codegen_flags: <defaults>
</compile_context>

<pallas_src>
import functools

import jax
import jax.numpy as jnp
from jax import lax
from jax.experimental import pallas as pl
from jax.experimental.pallas import tpu as pltpu

_MIB = 1024 * 1024


# ---------------------------------------------------------------------------
# Helpers
# ---------------------------------------------------------------------------

def _pick_row_tile(M, target=256):
    """Largest row tile <= target that divides M and is a multiple of 8.

    target=256 is a good default for v5e/v7x; on v6e (128 MiB VMEM) 512 is measurably
    better for the row-tiled dense kernels once vmem_limit_bytes is raised.
    """
    if M % 8 != 0:
        return M
    limit = min(target, M // 2) if M >= 16 else min(target, M)
    limit = max(limit, 8)
    tm = 8
    cand = 8
    while cand <= limit:
        if M % cand == 0:
            tm = cand
        cand += 8
    return tm


def _vmem_limit(*nbytes):
    """Scoped-VMEM limit from the actual footprint (+4 MiB margin, floor 32 MiB)."""
    total = sum(int(n) for n in nbytes)
    return int(min(128 * _MIB, max(32 * _MIB, total + 4 * _MIB)))


def _resident_spec(block_shape, index_map):
    """BlockSpec for a constant-index (resident) operand, single-buffered to halve its
    VMEM footprint. Falls back to default double-buffering on older jax."""
    try:
        return pl.BlockSpec(block_shape, index_map,
                            pipeline_mode=pl.Buffered(buffer_count=1))
    except (TypeError, AttributeError):
        return pl.BlockSpec(block_shape, index_map)


# ---------------------------------------------------------------------------
# Pallas kernels
# ---------------------------------------------------------------------------

def _ln_matmul_kernel(x_ref, g_ref, w_ref, o_ref):
    # Fused T5 RMSNorm (no mean, no bias) + projection; bf16 MXU, f32 accumulate,
    # bf16 store (qkv is the biggest per-layer intermediate -> halve its HBM traffic).
    x = x_ref[...]                                           # (tm, D) f32
    var = jnp.mean(x * x, axis=-1, keepdims=True)
    normed = (x * lax.rsqrt(var + 1e-6) * g_ref[...]).astype(jnp.bfloat16)
    y = jnp.dot(normed, w_ref[...], preferred_element_type=jnp.float32)
    o_ref[...] = y.astype(jnp.bfloat16)


def pallas_ln_matmul(x, gamma, w_bf16, *, target_tile=256):
    M, D = x.shape
    _, N = w_bf16.shape
    tm = _pick_row_tile(M, target_tile)
    limit = _vmem_limit(
        D * N * 2,            # resident bf16 weight (single-buffered)
        D * 4,                # resident gamma
        2 * tm * D * 4,       # double-buffered f32 input tiles
        2 * tm * N * 2,       # double-buffered bf16 output tiles
    )
    return pl.pallas_call(
        _ln_matmul_kernel,
        out_shape=jax.ShapeDtypeStruct((M, N), jnp.bfloat16),
        grid=(M // tm,),
        in_specs=[
            pl.BlockSpec((tm, D), lambda i: (i, 0)),
            _resident_spec((1, D), lambda i: (0, 0)),
            _resident_spec((D, N), lambda i: (0, 0)),    # resident weight
        ],
        out_specs=pl.BlockSpec((tm, N), lambda i: (i, 0)),
        compiler_params=pltpu.CompilerParams(
            dimension_semantics=("parallel",), vmem_limit_bytes=limit),
        cost_estimate=pl.CostEstimate(
            flops=2 * M * D * N,
            transcendentals=0,
            bytes_accessed=4 * M * D + 2 * D * N + 2 * M * N,
        ),
    )(x, gamma.reshape(1, D), w_bf16)


def _matmul_residual_kernel(x_ref, w_ref, res_ref, o_ref):
    # Output projection with the residual add fused in (free VPU filler).
    y = jnp.dot(x_ref[...].astype(jnp.bfloat16), w_ref[...],
                preferred_element_type=jnp.float32)
    o_ref[...] = res_ref[...] + y


def pallas_matmul_residual(x, w_bf16, residual, *, target_tile=256):
    M, K = x.shape
    _, N = w_bf16.shape
    tm = _pick_row_tile(M, target_tile)
    limit = _vmem_limit(
        K * N * 2,            # resident bf16 weight
        2 * tm * K * 2,       # bf16 ctx input tiles
        2 * tm * N * 4,       # f32 residual tiles
        2 * tm * N * 4,       # f32 output tiles
    )
    return pl.pallas_call(
        _matmul_residual_kernel,
        out_shape=jax.ShapeDtypeStruct((M, N), jnp.float32),
        grid=(M // tm,),
        in_specs=[
            pl.BlockSpec((tm, K), lambda i: (i, 0)),
            _resident_spec((K, N), lambda i: (0, 0)),    # resident weight
            pl.BlockSpec((tm, N), lambda i: (i, 0)),
        ],
        out_specs=pl.BlockSpec((tm, N), lambda i: (i, 0)),
        compiler_params=pltpu.CompilerParams(
            dimension_semantics=("parallel",), vmem_limit_bytes=limit),
        cost_estimate=pl.CostEstimate(
            flops=2 * M * K * N,
            transcendentals=0,
            bytes_accessed=2 * M * K + 2 * K * N + 8 * M * N,
        ),
    )(x, w_bf16, residual)


def _ln_ffn_residual_kernel(x_ref, g_ref, wi_ref, wo_ref, o_ref, *, ff_chunk):
    # Fused T5 RMSNorm + DenseReluDense (wo(relu(wi(x)))) + residual add.
    # Dff is chunked with a static loop so the (tm, chunk) f32 intermediate stays small
    # instead of spilling a (tm, Dff) value to VMEM between the two dots.
    x = x_ref[...]                                           # (tm, D) f32
    var = jnp.mean(x * x, axis=-1, keepdims=True)
    normed = (x * lax.rsqrt(var + 1e-6) * g_ref[...]).astype(jnp.bfloat16)
    dff = wi_ref.shape[1]
    y = jnp.zeros_like(x)
    for c0 in range(0, dff, ff_chunk):
        h = jnp.maximum(
            jnp.dot(normed, wi_ref[:, c0:c0 + ff_chunk],
                    preferred_element_type=jnp.float32), 0.0)
        y = y + jnp.dot(h.astype(jnp.bfloat16), wo_ref[c0:c0 + ff_chunk, :],
                        preferred_element_type=jnp.float32)
    o_ref[...] = x + y


def pallas_ln_ffn_residual(x, gamma, wi_bf16, wo_bf16, *, target_tile=256):
    M, D = x.shape
    _, Dff = wi_bf16.shape
    tm = _pick_row_tile(M, target_tile)
    # Lane-aligned Dff chunking (512 is a multiple of 128); full Dff when small.
    ff_chunk = 512 if (Dff > 512 and Dff % 512 == 0) else Dff
    limit = _vmem_limit(
        2 * D * Dff * 2,      # resident bf16 wi + wo (single-buffered)
        D * 4,                # resident gamma
        2 * tm * D * 4,       # f32 input tiles
        2 * tm * D * 4,       # f32 output tiles
        tm * ff_chunk * 4,    # live FFN intermediate
    )
    # TODO(synk): for T5-large/XL scale (D >= 1024 or Dff >= 4096) move Dff to a grid
    # axis marked "arbitrary" with an f32 accumulator scratch instead of keeping both
    # FFN weights fully resident (v7x has only 64 MiB VMEM).
    kernel = functools.partial(_ln_ffn_residual_kernel, ff_chunk=ff_chunk)
    return pl.pallas_call(
        kernel,
        out_shape=jax.ShapeDtypeStruct((M, D), jnp.float32),
        grid=(M // tm,),
        in_specs=[
            pl.BlockSpec((tm, D), lambda i: (i, 0)),
            _resident_spec((1, D), lambda i: (0, 0)),
            _resident_spec((D, Dff), lambda i: (0, 0)),  # resident weights
            _resident_spec((Dff, D), lambda i: (0, 0)),
        ],
        out_specs=pl.BlockSpec((tm, D), lambda i: (i, 0)),
        compiler_params=pltpu.CompilerParams(
            dimension_semantics=("parallel",), vmem_limit_bytes=limit),
        cost_estimate=pl.CostEstimate(
            flops=4 * M * D * Dff,
            transcendentals=0,
            bytes_accessed=8 * M * D + 4 * D * Dff,
        ),
    )(x, gamma.reshape(1, D), wi_bf16, wo_bf16)


def _attention_kernel(q_ref, k_ref, v_ref, bias_ref, mask_ref, o_ref):
    # One (batch, head) pair per grid program.  q/k/v arrive as aligned (S, Dh) blocks
    # (no in-kernel lane-offset head slicing), the per-head output is streamed straight
    # into its own (S, Dh) output block (no concatenate / merge_heads in-kernel).
    # NOTE: QK^T / PV contract over Dh (<=64) so these matmuls run at a fraction of the
    # 256-wide MXU; that is intrinsic to per-head attention — the full-width projections
    # are where MXU time is won.  For S >= 1024, switch to an online-softmax flash
    # pattern with a KV grid axis so the (S, S) scores never materialize (VMEM fix).
    q = q_ref[0, 0]                                          # (S, Dh) bf16
    k = k_ref[0, 0]
    v = v_ref[0, 0]
    # T5 attention is unscaled (scaling folded into init).
    s = lax.dot_general(q, k, (((1,), (1,)), ((), ())),
                        preferred_element_type=jnp.float32)  # (S, S) f32
    # bf16 bias upcast; the -1e9 mask stays f32 so it is not rounded before the exp.
    s = s + bias_ref[0].astype(jnp.float32) + mask_ref[0]
    m = jnp.max(s, axis=-1, keepdims=True)
    p = jnp.exp(s - m)
    denom = jnp.sum(p, axis=-1, keepdims=True)
    attn = (p * pl.reciprocal(denom, approx=True)).astype(jnp.bfloat16)
    ctx = jnp.dot(attn, v, preferred_element_type=jnp.float32)
    o_ref[0, 0] = ctx.astype(jnp.bfloat16)


def pallas_attention(q_heads, k_heads, v_heads, pos_bias_bf16, add_mask):
    # q/k/v: [B, H, S, Dh] bf16; pos_bias: [H, S, S] bf16 (shared across batch);
    # add_mask: [B, 1, S] f32 additive mask.
    B, H, S, Dh = q_heads.shape
    limit = _vmem_limit(
        2 * 3 * S * Dh * 2,   # double-buffered bf16 q/k/v blocks
        2 * S * S * 2,        # bf16 bias block
        2 * S * 4,            # f32 mask block
        2 * S * Dh * 2,       # bf16 output blocks
    )
    return pl.pallas_call(
        _attention_kernel,
        out_shape=jax.ShapeDtypeStruct((B, H, S, Dh), jnp.bfloat16),
        grid=(B, H),
        in_specs=[
            pl.BlockSpec((1, 1, S, Dh), lambda b, h: (b, h, 0, 0)),
            pl.BlockSpec((1, 1, S, Dh), lambda b, h: (b, h, 0, 0)),
            pl.BlockSpec((1, 1, S, Dh), lambda b, h: (b, h, 0, 0)),
            pl.BlockSpec((1, S, S), lambda b, h: (h, 0, 0)),   # shared bf16 bias
            pl.BlockSpec((1, 1, S), lambda b, h: (b, 0, 0)),   # f32 additive mask
        ],
        out_specs=pl.BlockSpec((1, 1, S, Dh), lambda b, h: (b, h, 0, 0)),
        compiler_params=pltpu.CompilerParams(
            dimension_semantics=("parallel", "parallel"), vmem_limit_bytes=limit),
        cost_estimate=pl.CostEstimate(
            flops=4 * B * H * S * S * Dh,
            transcendentals=B * H * S * S,
            bytes_accessed=2 * B * H * S * Dh * 4 + 2 * H * S * S + 4 * B * S,
        ),
    )(q_heads, k_heads, v_heads, pos_bias_bf16, add_mask)


def _ln_masked_mean_kernel(h_ref, g_ref, m_ref, o_ref):
    # Final T5 RMSNorm fused with the module's masked mean pooling.
    h = h_ref[0]                                             # (S, D) f32
    var = jnp.mean(h * h, axis=-1, keepdims=True)
    normed = h * lax.rsqrt(var + 1e-6) * g_ref[...]
    m = m_ref[0]                                             # (S, 1)
    sum_emb = jnp.sum(normed * m, axis=0, keepdims=True)     # (1, D)
    sum_mask = jnp.maximum(jnp.sum(m, axis=0, keepdims=True), 1e-9)   # (1, 1)
    # Exact divide (runs once per batch; avoids approx-reciprocal error on the output).
    o_ref[0] = sum_emb / sum_mask


def pallas_ln_masked_mean(hidden, gamma, mask_f):
    # hidden: [B, S, D] f32, mask_f: [B, S] float
    B, S, D = hidden.shape
    out = pl.pallas_call(
        _ln_masked_mean_kernel,
        out_shape=jax.ShapeDtypeStruct((B, 1, D), jnp.float32),
        grid=(B,),
        in_specs=[
            pl.BlockSpec((1, S, D), lambda b: (b, 0, 0)),
            _resident_spec((1, D), lambda b: (0, 0)),
            pl.BlockSpec((1, S, 1), lambda b: (b, 0, 0)),
        ],
        out_specs=pl.BlockSpec((1, 1, D), lambda b: (b, 0, 0)),
        compiler_params=pltpu.CompilerParams(dimension_semantics=("parallel",)),
    )(hidden, gamma.reshape(1, D), mask_f.reshape(B, S, 1))
    return out.reshape(B, D)


# ---------------------------------------------------------------------------
# Plain-JAX glue: relative position buckets, parameter init, encoder driver
# ---------------------------------------------------------------------------

def _relative_position_bucket(relative_position, num_buckets=32, max_distance=128):
    # Bidirectional (encoder) bucketing, matching HF T5.
    num_buckets = num_buckets // 2
    relative_buckets = (relative_position > 0).astype(jnp.int32) * num_buckets
    relative_position = jnp.abs(relative_position)
    max_exact = num_buckets // 2
    is_small = relative_position < max_exact
    rp_f = jnp.maximum(relative_position, 1).astype(jnp.float32)
    rp_if_large = max_exact + (
        jnp.log(rp_f / max_exact)
        / jnp.log(max_distance / max_exact)
        * (num_buckets - max_exact)
    ).astype(jnp.int32)
    rp_if_large = jnp.minimum(rp_if_large, num_buckets - 1)
    relative_buckets = relative_buckets + jnp.where(is_small, relative_position, rp_if_large)
    return relative_buckets


def init_params(key, vocab, D, H, Dh, Dff, num_layers, num_buckets=32):
    # TODO(synk): pretrained-checkpoint loading (T5EncoderModel.from_pretrained) has no
    # Pallas equivalent; weights are deterministic random inits with T5 shapes instead.
    def nrm(k, shape, scale=0.02, dtype=jnp.bfloat16):
        return (scale * jax.random.normal(k, shape)).astype(dtype)

    keys = jax.random.split(key, 3 + num_layers)
    inner = H * Dh
    params = {
        "embed": nrm(keys[0], (vocab, D), 1.0, jnp.float32),
        "rel_bias": nrm(keys[1], (num_buckets, H), 0.05, jnp.float32),
        "final_ln": jnp.ones((D,), jnp.float32),
        "layers": [],
    }
    for li in range(num_layers):
        lk = jax.random.split(keys[3 + li], 4)
        params["layers"].append({
            "ln_attn": jnp.ones((D,), jnp.float32),
            "wqkv": nrm(lk[0], (D, 3 * inner)),          # fused q|k|v projection (bf16)
            "wo": nrm(lk[1], (inner, D)),
            "ln_ff": jnp.ones((D,), jnp.float32),
            "wi": nrm(lk[2], (D, Dff)),
            "wo_ff": nrm(lk[3], (Dff, D)),
        })
    return params


def t5_encoder_forward(params, input_ids, attention_mask, *, H, Dh):
    B, S = input_ids.shape
    D = params["embed"].shape[1]
    inner = H * Dh
    BS = B * S

    # Embedding lookup (glue).
    hidden = jnp.take(params["embed"], input_ids, axis=0)            # (B, S, D) f32

    # Additive attention mask (key axis); kept in f32 so -1e9 is not rounded in bf16.
    mask_f = attention_mask.astype(jnp.float32)                      # (B, S)
    add_mask = (1.0 - mask_f)[:, None, :] * -1e9                     # (B, 1, S) f32

    # Relative position bias (H, S, S) bf16, shared across layers and batches as in T5.
    ctx = jnp.arange(S, dtype=jnp.int32)[:, None]
    mem = jnp.arange(S, dtype=jnp.int32)[None, :]
    buckets = _relative_position_bucket(mem - ctx)                   # (S, S)
    pos_bias = jnp.transpose(
        jnp.take(params["rel_bias"], buckets, axis=0), (2, 0, 1)).astype(jnp.bfloat16)

    h2 = hidden.reshape(BS, D)                                       # residual stream, f32
    for lp in params["layers"]:
        # --- self-attention block ------------------------------------------------
        # Fused RMSNorm + QKV projection; bf16 output (largest per-layer intermediate).
        qkv = pallas_ln_matmul(h2, lp["ln_attn"], lp["wqkv"])        # (BS, 3*inner) bf16
        # Head-major layout so the attention kernel gets aligned (S, Dh) blocks
        # (layout plumbing in XLA; removes all in-kernel lane-offset head slicing).
        qkv_h = qkv.reshape(B, S, 3, H, Dh).transpose(2, 0, 3, 1, 4)  # (3, B, H, S, Dh)
        ctx_h = pallas_attention(qkv_h[0], qkv_h[1], qkv_h[2], pos_bias, add_mask)
        ctx_out = ctx_h.transpose(0, 2, 1, 3).reshape(BS, inner)     # (BS, inner) bf16
        # Output projection + residual add fused.
        h2 = pallas_matmul_residual(ctx_out, lp["wo"], h2)           # (BS, D) f32

        # --- feed-forward block: fused RMSNorm + FFN (Dff-chunked) + residual ----
        h2 = pallas_ln_ffn_residual(h2, lp["ln_ff"], lp["wi"], lp["wo_ff"])

    # Final RMSNorm fused with the module's masked mean pooling (exact divide).
    # Padded query rows carry garbage hidden states, but they are zero-weighted here;
    # only the pooled embedding is returned, matching the PyTorch module.
    return pallas_ln_masked_mean(h2.reshape(B, S, D), params["final_ln"], mask_f)  # (B, D)


# ---------------------------------------------------------------------------
# Main
# ---------------------------------------------------------------------------

if __name__ == "__main__":
    # Small synthetic T5 config.
    B, S = 2, 8
    D, H, Dh, Dff = 32, 4, 8, 64
    VOCAB, N_LAYERS = 128, 2

    root = jax.random.PRNGKey(0)
    k_params, k_ids = jax.random.split(root)

    params = init_params(k_params, VOCAB, D, H, Dh, Dff, N_LAYERS)

    input_ids = jax.random.randint(k_ids, (B, S), 0, VOCAB, dtype=jnp.int32)
    lengths = jnp.array([S, 5], dtype=jnp.int32)
    attention_mask = (jnp.arange(S, dtype=jnp.int32)[None, :] < lengths[:, None]).astype(jnp.int32)

    fwd = jax.jit(functools.partial(t5_encoder_forward, H=H, Dh=Dh))
    mean_embeddings = fwd(params, input_ids, attention_mask)
    jax.block_until_ready(mean_embeddings)

    assert mean_embeddings.shape == (B, D)
    assert bool(jnp.all(jnp.isfinite(mean_embeddings)))
    print("KERNEL_OK")
</pallas_src>

<mosaic_0001>
module attributes {stable_mosaic.version = 11 : i64} {
  func.func @_ln_matmul_kernel(%arg0: i32, %arg1: memref<8x32xf32, #tpu.memory_space<vmem>>, %arg2: memref<1x32xf32, #tpu.memory_space<vmem>>, %arg3: memref<32x96xbf16, #tpu.memory_space<vmem>>, %arg4: memref<8x96xbf16, #tpu.memory_space<vmem>>) attributes {dimension_semantics = [#tpu.dimension_semantics<parallel>], iteration_bounds = array<i64: 2>, scalar_prefetch = 0 : i64, scratch_operands = 0 : i64, tpu.core_type = #tpu.core_type<tc>, window_params = [{transform_indices = @transform_0, window_bounds = array<i64: 8, 32>}, {pipeline_mode = #tpu.pipeline_mode<synchronous>, transform_indices = @transform_1, window_bounds = array<i64: 1, 32>}, {pipeline_mode = #tpu.pipeline_mode<synchronous>, transform_indices = @transform_2, window_bounds = array<i64: 32, 96>}, {transform_indices = @transform_3, window_bounds = array<i64: 8, 96>}]} {
    %c0 = arith.constant 0 : index
    %c0_0 = arith.constant 0 : index
    %0 = vector.load %arg1[%c0, %c0_0] : memref<8x32xf32, #tpu.memory_space<vmem>>, vector<8x32xf32>
    %1 = arith.mulf %0, %0 : vector<8x32xf32>
    %cst = arith.constant dense<0.000000e+00> : vector<8xf32>
    %2 = vector.multi_reduction <add>, %1, %cst [1] : vector<8x32xf32> to vector<8xf32>
    %3 = vector.shape_cast %2 : vector<8xf32> to vector<8x1xf32>
    %cst_1 = arith.constant 3.200000e+01 : f32
    %4 = vector.broadcast %cst_1 : f32 to vector<8x1xf32>
    %5 = arith.divf %3, %4 : vector<8x1xf32>
    %cst_2 = arith.constant 9.99999997E-7 : f32
    %6 = vector.broadcast %cst_2 : f32 to vector<8x1xf32>
    %7 = arith.addf %5, %6 : vector<8x1xf32>
    %8 = math.rsqrt %7 : vector<8x1xf32>
    %9 = vector.broadcast %8 : vector<8x1xf32> to vector<8x32xf32>
    %10 = arith.mulf %0, %9 : vector<8x32xf32>
    %c0_3 = arith.constant 0 : index
    %c0_4 = arith.constant 0 : index
    %11 = vector.load %arg2[%c0_3, %c0_4] : memref<1x32xf32, #tpu.memory_space<vmem>>, vector<1x32xf32>
    %12 = vector.broadcast %11 : vector<1x32xf32> to vector<8x32xf32>
    %13 = arith.mulf %10, %12 : vector<8x32xf32>
    %14 = arith.truncf %13 : vector<8x32xf32> to vector<8x32xbf16>
    %c0_5 = arith.constant 0 : index
    %c0_6 = arith.constant 0 : index
    %15 = vector.load %arg3[%c0_5, %c0_6] : memref<32x96xbf16, #tpu.memory_space<vmem>>, vector<32x96xbf16>
    %cst_7 = arith.constant dense<0.000000e+00> : vector<8x96xf32>
    %16 = tpu.matmul %14, %15, %cst_7 {dimension_numbers = #tpu.dot_dimension_numbers<[1], [0], [0], [1], [0, 0, 1, 1], [], []>} : vector<8x32xbf16>, vector<32x96xbf16>, vector<8x96xf32> -> vector<8x96xf32>
    %17 = arith.truncf %16 : vector<8x96xf32> to vector<8x96xbf16>
    %c0_8 = arith.constant 0 : index
    %c0_9 = arith.constant 0 : index
    %18 = vector.load %arg4[%c0_8, %c0_9] : memref<8x96xbf16, #tpu.memory_space<vmem>>, vector<8x96xbf16>
    tpu.vector_store %arg4[%c0_8, %c0_9], %17 {strides = array<i32>} : memref<8x96xbf16, #tpu.memory_space<vmem>>, vector<8x96xbf16>,
    return
  }
  func.func @transform_0(%arg0: i32) -> (i32, i32) {
    %c0_i32 = arith.constant 0 : i32
    %c0_i32_0 = arith.constant 0 : i32
    return %arg0, %c0_i32 : i32, i32
  }
  func.func @transform_1(%arg0: i32) -> (i32, i32) {
    %c0_i32 = arith.constant 0 : i32
    %c0_i32_0 = arith.constant 0 : i32
    %c0_i32_1 = arith.constant 0 : i32
    return %c0_i32, %c0_i32_0 : i32, i32
  }
  func.func @transform_2(%arg0: i32) -> (i32, i32) {
    %c0_i32 = arith.constant 0 : i32
    %c0_i32_0 = arith.constant 0 : i32
    %c0_i32_1 = arith.constant 0 : i32
    return %c0_i32, %c0_i32_0 : i32, i32
  }
  func.func @transform_3(%arg0: i32) -> (i32, i32) {
    %c0_i32 = arith.constant 0 : i32
    %c0_i32_0 = arith.constant 0 : i32
    return %arg0, %c0_i32 : i32, i32
  }
}

module attributes {stable_mosaic.version = 11 : i64} {
  func.func @_attention_kernel(%arg0: i32, %arg1: i32, %arg2: memref<1x1x8x8xbf16, #tpu.memory_space<vmem>>, %arg3: memref<1x1x8x8xbf16, #tpu.memory_space<vmem>>, %arg4: memref<1x1x8x8xbf16, #tpu.memory_space<vmem>>, %arg5: memref<1x8x8xbf16, #tpu.memory_space<vmem>>, %arg6: memref<1x1x8xf32, #tpu.memory_space<vmem>>, %arg7: memref<1x1x8x8xbf16, #tpu.memory_space<vmem>>) attributes {dimension_semantics = [#tpu.dimension_semantics<parallel>, #tpu.dimension_semantics<parallel>], iteration_bounds = array<i64: 2, 4>, scalar_prefetch = 0 : i64, scratch_operands = 0 : i64, tpu.core_type = #tpu.core_type<tc>, window_params = [{transform_indices = @transform_0, window_bounds = array<i64: 1, 1, 8, 8>}, {transform_indices = @transform_1, window_bounds = array<i64: 1, 1, 8, 8>}, {transform_indices = @transform_2, window_bounds = array<i64: 1, 1, 8, 8>}, {transform_indices = @transform_3, window_bounds = array<i64: 1, 8, 8>}, {transform_indices = @transform_4, window_bounds = array<i64: 1, 1, 8>}, {transform_indices = @transform_5, window_bounds = array<i64: 1, 1, 8, 8>}]} {
    %c0 = arith.constant 0 : index
    %c0_0 = arith.constant 0 : index
    %c0_1 = arith.constant 0 : index
    %c0_2 = arith.constant 0 : index
    %0 = vector.load %arg2[%c0, %c0_0, %c0_1, %c0_2] : memref<1x1x8x8xbf16, #tpu.memory_space<vmem>>, vector<1x1x8x8xbf16>
    %1 = vector.shape_cast %0 : vector<1x1x8x8xbf16> to vector<8x8xbf16>
    %c0_3 = arith.constant 0 : index
    %c0_4 = arith.constant 0 : index
    %c0_5 = arith.constant 0 : index
    %c0_6 = arith.constant 0 : index
    %2 = vector.load %arg3[%c0_3, %c0_4, %c0_5, %c0_6] : memref<1x1x8x8xbf16, #tpu.memory_space<vmem>>, vector<1x1x8x8xbf16>
    %3 = vector.shape_cast %2 : vector<1x1x8x8xbf16> to vector<8x8xbf16>
    %c0_7 = arith.constant 0 : index
    %c0_8 = arith.constant 0 : index
    %c0_9 = arith.constant 0 : index
    %c0_10 = arith.constant 0 : index
    %4 = vector.load %arg4[%c0_7, %c0_8, %c0_9, %c0_10] : memref<1x1x8x8xbf16, #tpu.memory_space<vmem>>, vector<1x1x8x8xbf16>
    %5 = vector.shape_cast %4 : vector<1x1x8x8xbf16> to vector<8x8xbf16>
    %cst = arith.constant dense<0.000000e+00> : vector<8x8xf32>
    %6 = tpu.matmul %1, %3, %cst {dimension_numbers = #tpu.dot_dimension_numbers<[1], [1], [0], [0], [0, 0, 1, 0], [], []>} : vector<8x8xbf16>, vector<8x8xbf16>, vector<8x8xf32> -> vector<8x8xf32>
    %c0_11 = arith.constant 0 : index
    %c0_12 = arith.constant 0 : index
    %c0_13 = arith.constant 0 : index
    %7 = vector.load %arg5[%c0_11, %c0_12, %c0_13] : memref<1x8x8xbf16, #tpu.memory_space<vmem>>, vector<1x8x8xbf16>
    %8 = vector.shape_cast %7 : vector<1x8x8xbf16> to vector<8x8xbf16>
    %9 = arith.extf %8 : vector<8x8xbf16> to vector<8x8xf32>
    %10 = arith.addf %6, %9 : vector<8x8xf32>
    %c0_14 = arith.constant 0 : index
    %c0_15 = arith.constant 0 : index
    %c0_16 = arith.constant 0 : index
    %11 = vector.load %arg6[%c0_14, %c0_15, %c0_16] : memref<1x1x8xf32, #tpu.memory_space<vmem>>, vector<1x1x8xf32>
    %12 = vector.shape_cast %11 : vector<1x1x8xf32> to vector<1x8xf32>
    %13 = vector.broadcast %12 : vector<1x8xf32> to vector<8x8xf32>
    %14 = arith.addf %10, %13 : vector<8x8xf32>
    %cst_17 = arith.constant dense<0xFF800000> : vector<8xf32>
    %15 = vector.multi_reduction <maximumf>, %14, %cst_17 [1] : vector<8x8xf32> to vector<8xf32>
    %16 = vector.shape_cast %15 : vector<8xf32> to vector<8x1xf32>
    %17 = vector.broadcast %16 : vector<8x1xf32> to vector<8x8xf32>
    %18 = arith.subf %14, %17 : vector<8x8xf32>
    %19 = math.exp %18 : vector<8x8xf32>
    %cst_18 = arith.constant dense<0.000000e+00> : vector<8xf32>
    %20 = vector.multi_reduction <add>, %19, %cst_18 [1] : vector<8x8xf32> to vector<8xf32>
    %21 = vector.shape_cast %20 : vector<8xf32> to vector<8x1xf32>
    %22 = tpu.reciprocal %21 {approx = true} : vector<8x1xf32> -> vector<8x1xf32>
    %23 = vector.broadcast %22 : vector<8x1xf32> to vector<8x8xf32>
    %24 = arith.mulf %19, %23 : vector<8x8xf32>
    %25 = arith.truncf %24 : vector<8x8xf32> to vector<8x8xbf16>
    %cst_19 = arith.constant dense<0.000000e+00> : vector<8x8xf32>
    %26 = tpu.matmul %25, %5, %cst_19 {dimension_numbers = #tpu.dot_dimension_numbers<[1], [0], [0], [1], [0, 0, 1, 1], [], []>} : vector<8x8xbf16>, vector<8x8xbf16>, vector<8x8xf32> -> vector<8x8xf32>
    %27 = arith.truncf %26 : vector<8x8xf32> to vector<8x8xbf16>
    %c0_20 = arith.constant 0 : index
    %c0_21 = arith.constant 0 : index
    %c0_22 = arith.constant 0 : index
    %c0_23 = arith.constant 0 : index
    %28 = vector.load %arg7[%c0_20, %c0_21, %c0_22, %c0_23] : memref<1x1x8x8xbf16, #tpu.memory_space<vmem>>, vector<1x1x8x8xbf16>
    %29 = vector.shape_cast %28 : vector<1x1x8x8xbf16> to vector<8x8xbf16>
    %30 = vector.shape_cast %27 : vector<8x8xbf16> to vector<1x1x8x8xbf16>
    tpu.vector_store %arg7[%c0_20, %c0_21, %c0_22, %c0_23], %30 {strides = array<i32>} : memref<1x1x8x8xbf16, #tpu.memory_space<vmem>>, vector<1x1x8x8xbf16>,
    return
  }
  func.func @transform_0(%arg0: i32, %arg1: i32) -> (i32, i32, i32, i32) {
    %c0_i32 = arith.constant 0 : i32
    %c0_i32_0 = arith.constant 0 : i32
    %c0_i32_1 = arith.constant 0 : i32
    return %arg0, %arg1, %c0_i32, %c0_i32_0 : i32, i32, i32, i32
  }
  func.func @transform_1(%arg0: i32, %arg1: i32) -> (i32, i32, i32, i32) {
    %c0_i32 = arith.constant 0 : i32
    %c0_i32_0 = arith.constant 0 : i32
    %c0_i32_1 = arith.constant 0 : i32
    return %arg0, %arg1, %c0_i32, %c0_i32_0 : i32, i32, i32, i32
  }
  func.func @transform_2(%arg0: i32, %arg1: i32) -> (i32, i32, i32, i32) {
    %c0_i32 = arith.constant 0 : i32
    %c0_i32_0 = arith.constant 0 : i32
    %c0_i32_1 = arith.constant 0 : i32
    return %arg0, %arg1, %c0_i32, %c0_i32_0 : i32, i32, i32, i32
  }
  func.func @transform_3(%arg0: i32, %arg1: i32) -> (i32, i32, i32) {
    %c0_i32 = arith.constant 0 : i32
    %c0_i32_0 = arith.constant 0 : i32
    %c0_i32_1 = arith.constant 0 : i32
    return %arg1, %c0_i32, %c0_i32_0 : i32, i32, i32
  }
  func.func @transform_4(%arg0: i32, %arg1: i32) -> (i32, i32, i32) {
    %c0_i32 = arith.constant 0 : i32
    %c0_i32_0 = arith.constant 0 : i32
    %c0_i32_1 = arith.constant 0 : i32
    return %arg0, %c0_i32, %c0_i32_0 : i32, i32, i32
  }
  func.func @transform_5(%arg0: i32, %arg1: i32) -> (i32, i32, i32, i32) {
    %c0_i32 = arith.constant 0 : i32
    %c0_i32_0 = arith.constant 0 : i32
    %c0_i32_1 = arith.constant 0 : i32
    return %arg0, %arg1, %c0_i32, %c0_i32_0 : i32, i32, i32, i32
  }
}

module attributes {stable_mosaic.version = 11 : i64} {
  func.func @_ln_masked_mean_kernel(%arg0: i32, %arg1: memref<1x8x32xf32, #tpu.memory_space<vmem>>, %arg2: memref<1x32xf32, #tpu.memory_space<vmem>>, %arg3: memref<1x8x1xf32, #tpu.memory_space<vmem>>, %arg4: memref<1x1x32xf32, #tpu.memory_space<vmem>>) attributes {dimension_semantics = [#tpu.dimension_semantics<parallel>], iteration_bounds = array<i64: 2>, scalar_prefetch = 0 : i64, scratch_operands = 0 : i64, tpu.core_type = #tpu.core_type<tc>, window_params = [{transform_indices = @transform_0, window_bounds = array<i64: 1, 8, 32>}, {pipeline_mode = #tpu.pipeline_mode<synchronous>, transform_indices = @transform_1, window_bounds = array<i64: 1, 32>}, {transform_indices = @transform_2, window_bounds = array<i64: 1, 8, 1>}, {transform_indices = @transform_3, window_bounds = array<i64: 1, 1, 32>}]} {
    %c0 = arith.constant 0 : index
    %c0_0 = arith.constant 0 : index
    %c0_1 = arith.constant 0 : index
    %0 = vector.load %arg1[%c0, %c0_0, %c0_1] : memref<1x8x32xf32, #tpu.memory_space<vmem>>, vector<1x8x32xf32>
    %1 = vector.shape_cast %0 : vector<1x8x32xf32> to vector<8x32xf32>
    %2 = arith.mulf %1, %1 : vector<8x32xf32>
    %cst = arith.constant dense<0.000000e+00> : vector<8xf32>
    %3 = vector.multi_reduction <add>, %2, %cst [1] : vector<8x32xf32> to vector<8xf32>
    %4 = vector.shape_cast %3 : vector<8xf32> to vector<8x1xf32>
    %cst_2 = arith.constant 3.200000e+01 : f32
    %5 = vector.broadcast %cst_2 : f32 to vector<8x1xf32>
    %6 = arith.divf %4, %5 : vector<8x1xf32>
    %cst_3 = arith.constant 9.99999997E-7 : f32
    %7 = vector.broadcast %cst_3 : f32 to vector<8x1xf32>
    %8 = arith.addf %6, %7 : vector<8x1xf32>
    %9 = math.rsqrt %8 : vector<8x1xf32>
    %10 = vector.broadcast %9 : vector<8x1xf32> to vector<8x32xf32>
    %11 = arith.mulf %1, %10 : vector<8x32xf32>
    %c0_4 = arith.constant 0 : index
    %c0_5 = arith.constant 0 : index
    %12 = vector.load %arg2[%c0_4, %c0_5] : memref<1x32xf32, #tpu.memory_space<vmem>>, vector<1x32xf32>
    %13 = vector.broadcast %12 : vector<1x32xf32> to vector<8x32xf32>
    %14 = arith.mulf %11, %13 : vector<8x32xf32>
    %c0_6 = arith.constant 0 : index
    %c0_7 = arith.constant 0 : index
    %c0_8 = arith.constant 0 : index
    %15 = vector.load %arg3[%c0_6, %c0_7, %c0_8] : memref<1x8x1xf32, #tpu.memory_space<vmem>>, vector<1x8x1xf32>
    %16 = vector.shape_cast %15 : vector<1x8x1xf32> to vector<8x1xf32>
    %17 = vector.broadcast %16 : vector<8x1xf32> to vector<8x32xf32>
    %18 = arith.mulf %14, %17 : vector<8x32xf32>
    %cst_9 = arith.constant dense<0.000000e+00> : vector<32xf32>
    %19 = vector.multi_reduction <add>, %18, %cst_9 [0] : vector<8x32xf32> to vector<32xf32>
    %20 = vector.shape_cast %19 : vector<32xf32> to vector<1x32xf32>
    %cst_10 = arith.constant dense<0.000000e+00> : vector<1xf32>
    %21 = vector.multi_reduction <add>, %16, %cst_10 [0] : vector<8x1xf32> to vector<1xf32>
    %22 = vector.shape_cast %21 : vector<1xf32> to vector<1x1xf32>
    %cst_11 = arith.constant 9.99999971E-10 : f32
    %23 = vector.broadcast %cst_11 : f32 to vector<1x1xf32>
    %24 = arith.maximumf %22, %23 : vector<1x1xf32>
    %25 = vector.broadcast %24 : vector<1x1xf32> to vector<1x32xf32>
    %26 = arith.divf %20, %25 : vector<1x32xf32>
    %c0_12 = arith.constant 0 : index
    %c0_13 = arith.constant 0 : index
    %c0_14 = arith.constant 0 : index
    %27 = vector.load %arg4[%c0_12, %c0_13, %c0_14] : memref<1x1x32xf32, #tpu.memory_space<vmem>>, vector<1x1x32xf32>
    %28 = vector.shape_cast %27 : vector<1x1x32xf32> to vector<1x32xf32>
    %29 = vector.shape_cast %26 : vector<1x32xf32> to vector<1x1x32xf32>
    tpu.vector_store %arg4[%c0_12, %c0_13, %c0_14], %29 {strides = array<i32>} : memref<1x1x32xf32, #tpu.memory_space<vmem>>, vector<1x1x32xf32>,
    return
  }
  func.func @transform_0(%arg0: i32) -> (i32, i32, i32) {
    %c0_i32 = arith.constant 0 : i32
    %c0_i32_0 = arith.constant 0 : i32
    %c0_i32_1 = arith.constant 0 : i32
    return %arg0, %c0_i32, %c0_i32_0 : i32, i32, i32
  }
  func.func @transform_1(%arg0: i32) -> (i32, i32) {
    %c0_i32 = arith.constant 0 : i32
    %c0_i32_0 = arith.constant 0 : i32
    %c0_i32_1 = arith.constant 0 : i32
    return %c0_i32, %c0_i32_0 : i32, i32
  }
  func.func @transform_2(%arg0: i32) -> (i32, i32, i32) {
    %c0_i32 = arith.constant 0 : i32
    %c0_i32_0 = arith.constant 0 : i32
    %c0_i32_1 = arith.constant 0 : i32
    return %arg0, %c0_i32, %c0_i32_0 : i32, i32, i32
  }
  func.func @transform_3(%arg0: i32) -> (i32, i32, i32) {
    %c0_i32 = arith.constant 0 : i32
    %c0_i32_0 = arith.constant 0 : i32
    %c0_i32_1 = arith.constant 0 : i32
    return %arg0, %c0_i32, %c0_i32_0 : i32, i32, i32
  }
}

module attributes {stable_mosaic.version = 11 : i64} {
  func.func @_matmul_residual_kernel(%arg0: i32, %arg1: memref<8x32xbf16, #tpu.memory_space<vmem>>, %arg2: memref<32x32xbf16, #tpu.memory_space<vmem>>, %arg3: memref<8x32xf32, #tpu.memory_space<vmem>>, %arg4: memref<8x32xf32, #tpu.memory_space<vmem>>) attributes {dimension_semantics = [#tpu.dimension_semantics<parallel>], iteration_bounds = array<i64: 2>, scalar_prefetch = 0 : i64, scratch_operands = 0 : i64, tpu.core_type = #tpu.core_type<tc>, window_params = [{transform_indices = @transform_0, window_bounds = array<i64: 8, 32>}, {pipeline_mode = #tpu.pipeline_mode<synchronous>, transform_indices = @transform_1, window_bounds = array<i64: 32, 32>}, {transform_indices = @transform_2, window_bounds = array<i64: 8, 32>}, {transform_indices = @transform_3, window_bounds = array<i64: 8, 32>}]} {
    %c0 = arith.constant 0 : index
    %c0_0 = arith.constant 0 : index
    %0 = vector.load %arg1[%c0, %c0_0] : memref<8x32xbf16, #tpu.memory_space<vmem>>, vector<8x32xbf16>
    %c0_1 = arith.constant 0 : index
    %c0_2 = arith.constant 0 : index
    %1 = vector.load %arg2[%c0_1, %c0_2] : memref<32x32xbf16, #tpu.memory_space<vmem>>, vector<32x32xbf16>
    %cst = arith.constant dense<0.000000e+00> : vector<8x32xf32>
    %2 = tpu.matmul %0, %1, %cst {dimension_numbers = #tpu.dot_dimension_numbers<[1], [0], [0], [1], [0, 0, 1, 1], [], []>} : vector<8x32xbf16>, vector<32x32xbf16>, vector<8x32xf32> -> vector<8x32xf32>
    %c0_3 = arith.constant 0 : index
    %c0_4 = arith.constant 0 : index
    %3 = vector.load %arg3[%c0_3, %c0_4] : memref<8x32xf32, #tpu.memory_space<vmem>>, vector<8x32xf32>
    %4 = arith.addf %3, %2 : vector<8x32xf32>
    %c0_5 = arith.constant 0 : index
    %c0_6 = arith.constant 0 : index
    %5 = vector.load %arg4[%c0_5, %c0_6] : memref<8x32xf32, #tpu.memory_space<vmem>>, vector<8x32xf32>
    tpu.vector_store %arg4[%c0_5, %c0_6], %4 {strides = array<i32>} : memref<8x32xf32, #tpu.memory_space<vmem>>, vector<8x32xf32>,
    return
  }
  func.func @transform_0(%arg0: i32) -> (i32, i32) {
    %c0_i32 = arith.constant 0 : i32
    %c0_i32_0 = arith.constant 0 : i32
    return %arg0, %c0_i32 : i32, i32
  }
  func.func @transform_1(%arg0: i32) -> (i32, i32) {
    %c0_i32 = arith.constant 0 : i32
    %c0_i32_0 = arith.constant 0 : i32
    %c0_i32_1 = arith.constant 0 : i32
    return %c0_i32, %c0_i32_0 : i32, i32
  }
  func.func @transform_2(%arg0: i32) -> (i32, i32) {
    %c0_i32 = arith.constant 0 : i32
    %c0_i32_0 = arith.constant 0 : i32
    return %arg0, %c0_i32 : i32, i32
  }
  func.func @transform_3(%arg0: i32) -> (i32, i32) {
    %c0_i32 = arith.constant 0 : i32
    %c0_i32_0 = arith.constant 0 : i32
    return %arg0, %c0_i32 : i32, i32
  }
}

module attributes {stable_mosaic.version = 11 : i64} {
  func.func @_ln_ffn_residual_kernel(%arg0: i32, %arg1: memref<8x32xf32, #tpu.memory_space<vmem>>, %arg2: memref<1x32xf32, #tpu.memory_space<vmem>>, %arg3: memref<32x64xbf16, #tpu.memory_space<vmem>>, %arg4: memref<64x32xbf16, #tpu.memory_space<vmem>>, %arg5: memref<8x32xf32, #tpu.memory_space<vmem>>) attributes {dimension_semantics = [#tpu.dimension_semantics<parallel>], iteration_bounds = array<i64: 2>, scalar_prefetch = 0 : i64, scratch_operands = 0 : i64, tpu.core_type = #tpu.core_type<tc>, window_params = [{transform_indices = @transform_0, window_bounds = array<i64: 8, 32>}, {pipeline_mode = #tpu.pipeline_mode<synchronous>, transform_indices = @transform_1, window_bounds = array<i64: 1, 32>}, {pipeline_mode = #tpu.pipeline_mode<synchronous>, transform_indices = @transform_2, window_bounds = array<i64: 32, 64>}, {pipeline_mode = #tpu.pipeline_mode<synchronous>, transform_indices = @transform_3, window_bounds = array<i64: 64, 32>}, {transform_indices = @transform_4, window_bounds = array<i64: 8, 32>}]} {
    %c0 = arith.constant 0 : index
    %c0_0 = arith.constant 0 : index
    %0 = vector.load %arg1[%c0, %c0_0] : memref<8x32xf32, #tpu.memory_space<vmem>>, vector<8x32xf32>
    %1 = arith.mulf %0, %0 : vector<8x32xf32>
    %cst = arith.constant dense<0.000000e+00> : vector<8xf32>
    %2 = vector.multi_reduction <add>, %1, %cst [1] : vector<8x32xf32> to vector<8xf32>
    %3 = vector.shape_cast %2 : vector<8xf32> to vector<8x1xf32>
    %cst_1 = arith.constant 3.200000e+01 : f32
    %4 = vector.broadcast %cst_1 : f32 to vector<8x1xf32>
    %5 = arith.divf %3, %4 : vector<8x1xf32>
    %cst_2 = arith.constant 9.99999997E-7 : f32
    %6 = vector.broadcast %cst_2 : f32 to vector<8x1xf32>
    %7 = arith.addf %5, %6 : vector<8x1xf32>
    %8 = math.rsqrt %7 : vector<8x1xf32>
    %9 = vector.broadcast %8 : vector<8x1xf32> to vector<8x32xf32>
    %10 = arith.mulf %0, %9 : vector<8x32xf32>
    %c0_3 = arith.constant 0 : index
    %c0_4 = arith.constant 0 : index
    %11 = vector.load %arg2[%c0_3, %c0_4] : memref<1x32xf32, #tpu.memory_space<vmem>>, vector<1x32xf32>
    %12 = vector.broadcast %11 : vector<1x32xf32> to vector<8x32xf32>
    %13 = arith.mulf %10, %12 : vector<8x32xf32>
    %14 = arith.truncf %13 : vector<8x32xf32> to vector<8x32xbf16>
    %cst_5 = arith.constant 0.000000e+00 : f32
    %15 = vector.broadcast %cst_5 : f32 to vector<8x32xf32>
    %c0_6 = arith.constant 0 : index
    %c0_7 = arith.constant 0 : index
    %16 = vector.load %arg3[%c0_6, %c0_7] : memref<32x64xbf16, #tpu.memory_space<vmem>>, vector<32x64xbf16>
    %cst_8 = arith.constant dense<0.000000e+00> : vector<8x64xf32>
    %17 = tpu.matmul %14, %16, %cst_8 {dimension_numbers = #tpu.dot_dimension_numbers<[1], [0], [0], [1], [0, 0, 1, 1], [], []>} : vector<8x32xbf16>, vector<32x64xbf16>, vector<8x64xf32> -> vector<8x64xf32>
    %cst_9 = arith.constant 0.000000e+00 : f32
    %18 = vector.broadcast %cst_9 : f32 to vector<8x64xf32>
    %19 = arith.maximumf %17, %18 : vector<8x64xf32>
    %20 = arith.truncf %19 : vector<8x64xf32> to vector<8x64xbf16>
    %c0_10 = arith.constant 0 : index
    %c0_11 = arith.constant 0 : index
    %21 = vector.load %arg4[%c0_10, %c0_11] : memref<64x32xbf16, #tpu.memory_space<vmem>>, vector<64x32xbf16>
    %cst_12 = arith.constant dense<0.000000e+00> : vector<8x32xf32>
    %22 = tpu.matmul %20, %21, %cst_12 {dimension_numbers = #tpu.dot_dimension_numbers<[1], [0], [0], [1], [0, 0, 1, 1], [], []>} : vector<8x64xbf16>, vector<64x32xbf16>, vector<8x32xf32> -> vector<8x32xf32>
    %23 = arith.addf %15, %22 : vector<8x32xf32>
    %24 = arith.addf %0, %23 : vector<8x32xf32>
    %c0_13 = arith.constant 0 : index
    %c0_14 = arith.constant 0 : index
    %25 = vector.load %arg5[%c0_13, %c0_14] : memref<8x32xf32, #tpu.memory_space<vmem>>, vector<8x32xf32>
    tpu.vector_store %arg5[%c0_13, %c0_14], %24 {strides = array<i32>} : memref<8x32xf32, #tpu.memory_space<vmem>>, vector<8x32xf32>,
    return
  }
  func.func @transform_0(%arg0: i32) -> (i32, i32) {
    %c0_i32 = arith.constant 0 : i32
    %c0_i32_0 = arith.constant 0 : i32
    return %arg0, %c0_i32 : i32, i32
  }
  func.func @transform_1(%arg0: i32) -> (i32, i32) {
    %c0_i32 = arith.constant 0 : i32
    %c0_i32_0 = arith.constant 0 : i32
    %c0_i32_1 = arith.constant 0 : i32
    return %c0_i32, %c0_i32_0 : i32, i32
  }
  func.func @transform_2(%arg0: i32) -> (i32, i32) {
    %c0_i32 = arith.constant 0 : i32
    %c0_i32_0 = arith.constant 0 : i32
    %c0_i32_1 = arith.constant 0 : i32
    return %c0_i32, %c0_i32_0 : i32, i32
  }
  func.func @transform_3(%arg0: i32) -> (i32, i32) {
    %c0_i32 = arith.constant 0 : i32
    %c0_i32_0 = arith.constant 0 : i32
    %c0_i32_1 = arith.constant 0 : i32
    return %c0_i32, %c0_i32_0 : i32, i32
  }
  func.func @transform_4(%arg0: i32) -> (i32, i32) {
    %c0_i32 = arith.constant 0 : i32
    %c0_i32_0 = arith.constant 0 : i32
    return %arg0, %c0_i32 : i32, i32
  }
}

</mosaic_0001>

<bundles_post_ra>
// kernel: t5_encoder_forward.9
= control target key start
LH: loop header
LB: loop body
LE: loop exit
PB: predicated region body
PF: predicated region fallthrough
CT: control target
= control target key end

     0   :  { %s350_s12 = smov 0   ;;  %s382_s0 = inlined_call_operand.vmem [shape: f32[16,32], index: 0, kind: input, shape index: {}]   ;;  %s383_s1 = inlined_call_operand.vmem [shape: f32[1,32], index: 1, kind: input, shape index: {}]   ;;  %s384_s2 = inlined_call_operand.vmem [shape: bf16[32,96], index: 2, kind: input, shape index: {}]   ;;  %s385_s3 = inlined_call_operand.vmem [shape: bf16[16,96], index: 3, kind: output, shape index: {}]  }
   0x1 LB: > { %s287_s13 = sadd.s32 4294967295, %s327_s12   ;;  %p291_p0 = scmp.ge.s32.totalorder %s327_s12, 1  ;;  %s327_s12 = sphi %s350_s12, %s13_s12  }
   0x2   : > { %p136_p1 = scmp.lt.s32.totalorder %s327_s12, 3 }
   0x4   : > { %p137_p2 = pnand %p291_p0, %p136_p1 }
   0x5   : > { %p158_p3 = scmp.lt.s32.totalorder (!%p137_p2), %s287_s13, 1 }
   0x6   : > { %140 = sbr.rel (%p137_p2) target bundleno = 296 (0x128), region = 32 }
   0xb   : > { %s387_s13 = smov (!%p158_p3, %s287_s13), 1  ;;  %vm169_vm0 = vcmask 261120   ;;  %v329_v3 = vmov 32.0   ;;  %v306_v7 = vld [vmem:[%s384_s2 + $0x8] sm:$0xff]  ;;  %v305_v9 = vld [vmem:[%s384_s2] sm:$0xff]  ;;  %vm232_vm5 = vcmask 781312  }
   0xc   : > { %s292_s14 = sshll.u32 %s387_s13, 3  ;;  %317 = vrcp.f32 %v329_v3  ;;  %224 = vmatpush.bf16.msra.mxu0 %v306_v7  ;;  %v316_v21 = vld [vmem:[%s383_s1] ss:$0 sm:$0xff]  ;;  %s293_s24 = sshll.u32 %s387_s13, 2 }
   0xd   : > { %s161_s17 = scalar_lea.vmem %s382_s0, %s292_s14  ;;  %s165_s27 = scalar_lea.vmem %s385_s3, %s293_s24 }
   0xe   : > { %v167_v0 = vld [vmem:[%s161_s17] sm:$0xff] }
   0xf   : > { %v168_v1 = vmul.f32 %v167_v0, %v167_v0 }
  0x10   : > { %225 = vmatpush.bf16.msra.mxu0 %v305_v9 }
  0x11   : > { %v170_v2 = vsel %vm169_vm0, %v168_v1, 0.0 }
  0x12   : > { %171 = vadd.xlane.f32.xlu0 %v170_v2  ;;  %v318_v4 = vpop.eup %317 }
  0x13   : > { %v174_v5 = vmul.f32 32.0, %v318_v4  ;;  %vm178_vm1 = vweird.f32 %v318_v4 }
  0x15   : > { %v175_v6 = vsub.f32 1.0, %v174_v5 }
  0x17   : > { %v176_v8 = vmul.f32 %v318_v4, %v175_v6 }
  0x19   : > { %v177_v10 = vadd.f32 %v318_v4, %v176_v8 }
  0x1b   : > { %v179_v11 = vsel %vm178_vm1, %v318_v4, %v177_v10 }
  0x85   : > { %v172_v12 = vpop.xlane.xlu0 %171 }
  0x86   : > { %v180_v13 = vmul.f32 %v179_v11, %v172_v12 }
  0x88   : > { %v181_v14 = vadd.f32 1e-06, %v180_v13 }
  0x8a   : > { %319 = vrsqrt.f32 %v181_v14  ;;  %vm188_vm3 = vweird.f32 %v181_v14 }
  0x90   : > { %v320_v15 = vpop.eup %319 }
  0x91   : > { %v183_v16 = vmul.f32 %v320_v15, %v181_v14  ;;  %vm189_vm2 = vweird.f32 %v320_v15 }
  0x92   : > { %vm190_vm4 = vmor %vm188_vm3, %vm189_vm2 }
  0x93   : > { %v184_v17 = vmul.f32 %v320_v15, %v183_v16 }
  0x95   : > { %v185_v18 = vmul.f32 0.5, %v184_v17 }
  0x97   : > { %v186_v19 = vsub.f32 1.5, %v185_v18 }
  0x99   : > { %v187_v20 = vmul.f32 %v320_v15, %v186_v19 }
  0x9b   : > { %v191_v22 = vsel %vm190_vm4, %v320_v15, %v187_v20 }
  0x9c   : > { %v192_v23 = vmul.f32 %v191_v22, %v167_v0 }
  0x9e   : > { %v197_v24 = vmul.f32 %v316_v21, %v192_v23 }
  0xa0   : > { %v198_v25 = vpack.c.bf16 %v197_v24, %v197_v24 }
  0xa2   : > { %302 = vmatmul.msk.bf16.vlgmr.msra.gmra.mxu0 %vm169_vm0, %v198_v25 }
 0x11f   : > { %v227_v26 = vpop.f32.mrf.mxu0 }
 0x120   : > { %v231_v27 = vpack.c.bf16 %v227_v26, %v227_v26 }
 0x122   : > { %233 = vst.msk [vmem:[%s165_s27] sm:$0xf] %vm232_vm5, %v231_v27 }
 0x127   : > { %v229_v28 = vpop.f32.mrf.mxu0 }
 0x128 PF: > { %s13_s12 = sadd.s32 1, %s327_s12  }
 0x129   : > { %p10_p4 = scmp.ge.s32.totalorder %s13_s12, 4  }
 0x12b   :  { %12 = sbr.rel (!%p10_p4) target bundleno = 1 (0x1), region = 62 }

// kernel: t5_encoder_forward.17
= control target key start
LH: loop header
LB: loop body
LE: loop exit
PB: predicated region body
PF: predicated region fallthrough
CT: control target
= control target key end

     0   :  { %8 = vsyncpa [#allocation3], 0  ;;  %s575_s0 = inlined_call_operand.vmem [shape: f32[2,8,32], index: 0, kind: input, shape index: {}]   ;;  %s576_s1 = inlined_call_operand.vmem [shape: f32[1,32], index: 1, kind: input, shape index: {}]   ;;  %s577_s2 = inlined_call_operand.vmem [shape: f32[2,8,1], index: 2, kind: input, shape index: {}]   ;;  %s578_s3 = inlined_call_operand.hbm [shape: f32[2,1,32], index: 3, kind: output, shape index: {}]  }
   0x1   :  { %10 = vsyncpa [#allocation3 + $0x1], 0  ;;  %s482_s12 = smov 0   ;;  %s484_s13 = smov 0  }
   0x2   :  { %s486_s14 = smov 0   ;;  %s488_s15 = smov 0  }
   0x3 LB: > { %s503_s16 = sadd.s32 4294967295, %s458_s15   ;;  %s338_s17 = sadd.s32 4294967294, %s458_s15   ;;  %s458_s15 = sphi %s488_s15, %s584_s15   ;;  %s454_s14 = sphi %s486_s14, %s583_s14   ;;  %s450_s13 = sphi %s484_s13, %s582_s13   ;;  %s446_s12 = sphi %s482_s12, %s581_s12  }
   0x4   : > { %s507_s18 = sadd.s32 1, %s458_s15   ;;  %s96_s19 = sadd.s32 1, %s454_s14 }
   0x5   : > { %s93_s20 = ssub.s32 %s458_s15, %s507_s18  ;;  %p106_p0 = scmp.ne.s32.totalorder %s454_s14, %s450_s13 }
   0x6   : > { %p94_p1 = scmp.eq.s32.totalorder %s93_s20, 0  ;;  %p107_p2 = scmp.eq.s32.totalorder %s503_s16, 1 }
   0x7   : > { %p112_p3 = scmp.ne.s32.totalorder %s450_s13, %s446_s12  ;;  %p113_p4 = scmp.eq.s32.totalorder %s338_s17, 1 }
   0x8   : > { %s518_s21 = scalar_select %p94_p1, %s454_s14, %s96_s19  }
   0x9   : > { %p520_p5 = por %p107_p2, %p106_p0  ;;  %p524_p6 = por %p113_p4, %p112_p3 }
   0xa   : > { %p341_p7 = scmp.ge.s32.totalorder %s458_s15, 1  ;;  %p148_p8 = scmp.lt.s32.totalorder %s458_s15, 3 }
   0xc   : > { %p149_p9 = pnand %p341_p7, %p148_p8 }
   0xd   : > { %p174_p10 = scmp.lt.s32.totalorder (!%p149_p9), %s503_s16, 1  ;;  %s172_s7 = sand.u32 (!%p149_p9), 1, %s450_s13  }
   0xe   : > { %152 = sbr.rel (%p149_p9) target bundleno = 189 (0xbd), region = 32  ;;  %s267_s10 = scalar_lea.hbm (!%p149_p9), %s578_s3, %s503_s16 }
   0xf   : > { %s173_s11 = scalar_lea.vmem (!%p149_p9), [#allocation2], %s172_s7  ;;  %s271_s19 = sshll.u32 (!%p149_p9), %s267_s10, 4  ;;  %s272_s19 = int_to_ptr.hbm [resolvable:$true] %s271_s19 }
  0x10   : > { %s269_s17 = sshll.u32 (!%p149_p9), %s173_s11, 4  ;;  %s259_s20 = scalar_lea.sflag (!%p149_p9), [#allocation3], %s172_s7  ;;  %s270_s17 = int_to_ptr.vmem [resolvable:$true] %s269_s17 }
  0x11   : > { %s416_s27 = scalar_lea.hbm (!%p149_p9), %s578_s3, 2 }
  0x13   : > { %v460_v0 = vmov 0   ;;  %s175_s24 = scalar_select %p174_p10, %s503_s16, 1  ;;  %vm227_vm0 = vcmask 7168   ;;  %vm184_vm1 = vcmask 261120   ;;  %v461_v13 = vmov 32.0  }
  0x14   : > { %387 = vset.pattern.permute.xlu0 %v460_v0  ;;  %388 = vset.pattern.permute.xlu1 %v460_v0  ;;  %390 = vrcp.f32 %v461_v13  ;;  %v389_v30 = vld [vmem:[%s576_s1] ss:$0 sm:$0xff]  ;;  %vm256_vm10 = vcmask 253952  }
  0x15   : > { %s342_s25 = sshll.u32 %s175_s24, 3  ;;  %s410_s24 = sshra.s32 %s272_s19, 4  ;;  %s411_s24 = int_to_ptr.hbm [resolvable:$true] %s410_s24 }
  0x16   : > { %s177_s28 = scalar_lea.vmem %s575_s0, %s342_s25  ;;  %s181_s4 = scalar_lea.vmem %s577_s2, %s342_s25 }
  0x17   : > { %v182_v1 = vld [vmem:[%s177_s28] sm:$0xff]  ;;  %s412_s16 = scalar_lea.hbm %s411_s24, 1  ;;  %p417_p0 = scmp.lt.s32.totalorder %s411_s24, %s578_s3 }
  0x18   : > { %v213_v2 = vld [vmem:[%s181_s4] sm:$0xff]  ;;  %v183_v3 = vmul.f32 %v182_v1, %v182_v1  ;;  %p413_p11 = scmp.ne.s32.totalorder %s411_s24, %s412_s16  ;;  %p418_p1 = scmp.lt.s32.totalorder %s416_s27, %s412_s16 }
  0x19   : > { %v228_v4 = vsel %vm227_vm0, %v213_v2, 0.0  ;;  %216 = vperm.xlu1 %388, %v213_v2  }
  0x1a   : > { %v229_v5 = vrot.slane %v228_v4, 4  ;;  %v185_v6 = vsel %vm184_vm1, %v183_v3, 0.0  ;;  %v391_v14 = vpop.eup %390  ;;  %p414_p12 = pnand %p413_p11, %p520_p5  ;;  %p419_p2 = por %p418_p1, %p417_p0 }
  0x1b   : > { %186 = vadd.xlane.f32.xlu0 %v185_v6  ;;  %v189_v15 = vmul.f32 32.0, %v391_v14  ;;  %vm193_vm2 = vweird.f32 %v391_v14 }
  0x1c   : > { %v230_v7 = vadd.f32 %v229_v5, %v228_v4  ;;  %p415_p13 = pneg %p414_p12 }
  0x1d   : > { %v190_v16 = vsub.f32 1.0, %v189_v15 }
  0x1e   : > { %v231_v8 = vrot.slane %v230_v7, 2  ;;  %p420_p3 = pnand %p419_p2, %p415_p13 }
  0x1f   : > { %v191_v17 = vmul.f32 %v391_v14, %v190_v16 }
  0x20   : > { %v232_v9 = vadd.f32 %v231_v8, %v230_v7 }
  0x21   : > { %v192_v18 = vadd.f32 %v391_v14, %v191_v17 }
  0x22   : > { %v233_v10 = vrot.slane %v232_v9, 1 }
  0x23   : > { %v194_v19 = vsel %vm193_vm2, %v391_v14, %v192_v18 }
  0x24   : > { %v234_v11 = vadd.f32 %v233_v10, %v232_v9 }
  0x26   : > { %v235_v12 = vmax.f32 %v234_v11, 1e-09 }
  0x2f   : > { %238 = vperm.xlu0 %387, %v235_v12  }
  0x8b   : > { %v217_v33 = vpop.permute.xlu1 %216 }
  0x8e   : > { %v187_v20 = vpop.xlane.xlu0 %186 }
  0x8f   : > { %v195_v21 = vmul.f32 %v194_v19, %v187_v20 }
  0x91   : > { %v196_v22 = vadd.f32 1e-06, %v195_v21 }
  0x93   : > { %392 = vrsqrt.f32 %v196_v22  ;;  %vm203_vm4 = vweird.f32 %v196_v22 }
  0x99   : > { %v393_v23 = vpop.eup %392 }
  0x9a   : > { %v198_v24 = vmul.f32 %v393_v23, %v196_v22  ;;  %vm204_vm3 = vweird.f32 %v393_v23 }
  0x9b   : > { %vm205_vm5 = vmor %vm203_vm4, %vm204_vm3 }
  0x9c   : > { %v199_v25 = vmul.f32 %v393_v23, %v198_v24 }
  0x9e   : > { %v200_v26 = vmul.f32 0.5, %v199_v25 }
  0xa0   : > { %v201_v27 = vsub.f32 1.5, %v200_v26 }
  0xa1   : > { %v239_v28 = vpop.permute.xlu0 %238 }
  0xa2   : > { %394 = vrcp.f32 %v239_v28  ;;  %v202_v29 = vmul.f32 %v393_v23, %v201_v27  ;;  %v252_v45 = vand.u32 2147483648, %v239_v28  ;;  %vm246_vm7 = vweird.f32 %v239_v28 }
  0xa3   : > { %v250_v46 = vand.u32 2147483647, %v239_v28 }
  0xa4   : > { %v206_v31 = vsel %vm205_vm5, %v393_v23, %v202_v29  ;;  %v253_v50 = vor.u32 1.1754944e-38, %v252_v45 }
  0xa5   : > { %v207_v32 = vmul.f32 %v206_v31, %v182_v1  ;;  %vm251_vm9 = vcmp.eq.f32.partialorder %v250_v46, 8.507059e+37 }
  0xa7   : > { %v212_v35 = vmul.f32 %v389_v30, %v207_v32 }
  0xa8   : > { %v395_v34 = vpop.eup %394 }
  0xa9   : > { %v242_v36 = vmul.f32 %v395_v34, %v239_v28  ;;  %v219_v37 = vmul.f32 %v217_v33, %v212_v35  ;;  %vm247_vm6 = vweird.f32 %v395_v34 }
  0xaa   : > { %vm248_vm8 = vmor %vm246_vm7, %vm247_vm6 }
  0xab   : > { %v243_v38 = vsub.f32 1.0, %v242_v36  ;;  %v220_v39 = vsel %vm184_vm1, %v219_v37, 0.0 }
  0xac   : > { %v221_v41 = vrot.slane %v220_v39, 4 }
  0xad   : > { %v244_v40 = vmul.f32 %v395_v34, %v243_v38 }
  0xae   : > { %v222_v42 = vadd.f32 %v221_v41, %v220_v39 }
  0xaf   : > { %v245_v43 = vadd.f32 %v395_v34, %v244_v40 }
  0xb0   : > { %v223_v44 = vrot.slane %v222_v42, 2 }
  0xb1   : > { %v249_v48 = vsel %vm248_vm8, %v395_v34, %v245_v43 }
  0xb2   : > { %v224_v47 = vadd.f32 %v223_v44, %v222_v42  ;;  %v254_v52 = vsel %vm251_vm9, %v253_v50, %v249_v48 }
  0xb4   : > { %v225_v49 = vrot.slane %v224_v47, 1 }
  0xb6   : > { %v226_v51 = vadd.f32 %v225_v49, %v224_v47 }
  0xb8   : > { %v255_v53 = vmul.f32 %v254_v52, %v226_v51 }
  0xba   : > { %257 = vst.msk [vmem:[%s173_s11] sm:$0x1] %vm256_vm10, %v255_v53 }
  0xbb   : > { %423 = shalt.err (!%p420_p3)
}
  0xbc   : > { %346 = dma.vmem_to_hbm [thread:$0]  (%p520_p5), %s270_s17, 16, %s272_s19, %s259_s20  }
  0xbd PF: > { %p352_p4 = scmp.ge.s32.totalorder %s458_s15, 2  ;;  %s283_s30 = sand.u32 1, %s446_s12  }
  0xbe   : > { %s284_s4 = scalar_lea.sflag [#allocation3], %s283_s30 }
  0xbf   : > { %p349_p7 = pnand %p352_p4, %p524_p6 }
  0xc1   : > { %p350_p8 = pneg %p349_p7 }
  0xc3   : > { %441 = dma.done.wait (%p350_p8), %s284_s4, 16  }
  0xc4   : > { %443 = vsyncadd (%p350_p8), %s284_s4, 4294967280  ;;  %p13_p9 = scmp.ge.s32.totalorder %s507_s18, 4   ;;  %s581_s12 = smov %s450_s13 }
  0xc5   : > { %s582_s13 = smov %s454_s14  ;;  %s583_s14 = smov %s518_s21 }
  0xc6   : > { %s584_s15 = smov %s507_s18  ;;  %15 = sbr.rel (!%p13_p9) target bundleno = 3 (0x3), region = 70 }
  0xcb   :  { %289 = vsyncpa [#allocation3], 1 }
  0xcc   :  { %291 = vsyncpa [#allocation3 + $0x1], 1 }

// kernel: t5_encoder_forward.11
= control target key start
LH: loop header
LB: loop body
LE: loop exit
PB: predicated region body
PF: predicated region fallthrough
CT: control target
= control target key end

     0   :  { %s343_s12 = smov 0   ;;  %s363_s0 = inlined_call_operand.vmem [shape: bf16[16,32], index: 0, kind: input, shape index: {}]   ;;  %s364_s1 = inlined_call_operand.vmem [shape: bf16[32,32], index: 1, kind: input, shape index: {}]   ;;  %s365_s2 = inlined_call_operand.vmem [shape: f32[16,32], index: 2, kind: input, shape index: {}]   ;;  %s366_s3 = inlined_call_operand.vmem [shape: f32[16,32], index: 3, kind: output, shape index: {}]  }
   0x1 LB: > { %s286_s13 = sadd.s32 4294967295, %s321_s12   ;;  %p290_p0 = scmp.ge.s32.totalorder %s321_s12, 1  ;;  %s321_s12 = sphi %s343_s12, %s13_s12  }
   0x2   : > { %p145_p1 = scmp.lt.s32.totalorder %s321_s12, 3 }
   0x4   : > { %p146_p2 = pnand %p290_p0, %p145_p1 }
   0x5   : > { %p171_p3 = scmp.lt.s32.totalorder (!%p146_p2), %s286_s13, 1 }
   0x6   : > { %149 = sbr.rel (%p146_p2) target bundleno = 153 (0x99), region = 32 }
   0xb   : > { %v306_v0 = vld [vmem:[%s364_s1 + $0x8] sm:$0xff]  ;;  %v305_v1 = vld [vmem:[%s364_s1] sm:$0xff]  ;;  %s368_s13 = smov (!%p171_p3, %s286_s13), 1  ;;  %vm201_vm0 = vcmask 261120  }
   0xc   : > { %211 = vmatpush.bf16.msra.mxu0 %v306_v0  ;;  %s291_s18 = sshll.u32 %s368_s13, 2  ;;  %s292_s22 = sshll.u32 %s368_s13, 3 }
   0xd   : > { %s174_s21 = scalar_lea.vmem %s363_s0, %s291_s18  ;;  %s178_s25 = scalar_lea.vmem %s365_s2, %s292_s22 }
   0xe   : > { %v184_v2 = vld [vmem:[%s174_s21] sm:$0xf]  ;;  %s182_s28 = scalar_lea.vmem %s366_s3, %s292_s22 }
   0xf   : > { %v218_v3 = vld [vmem:[%s178_s25] sm:$0xff] }
  0x10   : > { %212 = vmatpush.bf16.msra.mxu0 %v305_v1 }
  0x13   : > { %302 = vmatmul.msk.bf16.vlgmr.msra.gmra.mxu0 %vm201_vm0, %v184_v2 }
  0x90   : > { %v214_v4 = vpop.f32.mrf.mxu0 }
  0x91   : > { %v219_v5 = vadd.f32 %v218_v3, %v214_v4 }
  0x93   : > { %220 = vst.msk [vmem:[%s182_s28] sm:$0xff] %vm201_vm0, %v219_v5 }
  0x98   : > { %v216_v6 = vpop.f32.mrf.mxu0 }
  0x99 PF: > { %s13_s12 = sadd.s32 1, %s321_s12  }
  0x9a   : > { %p10_p4 = scmp.ge.s32.totalorder %s13_s12, 4  }
  0x9c   :  { %12 = sbr.rel (!%p10_p4) target bundleno = 1 (0x1), region = 65 }

// kernel: t5_encoder_forward.10
= control target key start
LH: loop header
LB: loop body
LE: loop exit
PB: predicated region body
PF: predicated region fallthrough
CT: control target
= control target key end

     0   :  { %s691_s18 = smov 0   ;;  %s693_s19 = smov 0   ;;  %s765_s0 = inlined_call_operand.vmem [shape: bf16[2,4,8,8], index: 0, kind: input, shape index: {}]   ;;  %s766_s1 = inlined_call_operand.vmem [shape: bf16[2,4,8,8], index: 1, kind: input, shape index: {}]   ;;  %s767_s2 = inlined_call_operand.vmem [shape: bf16[2,4,8,8], index: 2, kind: input, shape index: {}]   ;;  %s768_s3 = inlined_call_operand.vmem [shape: bf16[4,8,8], index: 3, kind: input, shape index: {}]   ;;  %s769_s4 = inlined_call_operand.vmem [shape: f32[2,1,8], index: 4, kind: input, shape index: {}]   ;;  %s770_s5 = inlined_call_operand.vmem [shape: bf16[2,4,8,8], index: 5, kind: output, shape index: {}]  }
   0x1   :  { %s695_s20 = smov 0   ;;  %s697_s21 = smov 0  }
   0x2   :  { %s699_s22 = smov 0  }
   0x3 LB: > { %s24_s23 = sadd.s32 1, %s651_s20  ;;  %s27_s24 = sadd.s32 1, %s655_s21  ;;  %s659_s22 = sphi %s699_s22, %s15_s22   ;;  %s655_s21 = sphi %s697_s21, %s774_s21   ;;  %s651_s20 = sphi %s695_s20, %s773_s20   ;;  %s647_s19 = sphi %s693_s19, %s772_s19   ;;  %s643_s18 = sphi %s691_s18, %s771_s18  }
   0x4   : > { %p25_p0 = scmp.ge.s32.totalorder %s24_s23, 4  ;;  %p562_p1 = scmp.ge.s32.totalorder %s659_s22, 1 }
   0x5   : > { %p253_p2 = scmp.lt.s32.totalorder %s659_s22, 9 }
   0x6   : > { %s776_s23 = smov (%p25_p0, %s24_s23), 0  ;;  %s778_s24 = smov (!%p25_p0, %s27_s24), %s655_s21 }
   0x7   : > { %p254_p3 = pnand %p562_p1, %p253_p2  ;;  %p29_p4 = scmp.ge.s32.totalorder %s778_s24, 2 }
   0x8   : > { %p310_p5 = scmp.lt.s32.totalorder (!%p254_p3), %s647_s19, 1  ;;  %p312_p6 = scmp.lt.s32.totalorder (!%p254_p3), %s643_s18, 3 }
   0x9   : > { %s780_s24 = smov (%p29_p4, %s778_s24), 0  ;;  %257 = sbr.rel (%p254_p3) target bundleno = 548 (0x224), region = 40 }
   0xe   : > { %s782_s19 = smov (!%p310_p5, %s647_s19), 1  ;;  %s784_s18 = smov (!%p312_p6, %s643_s18), 3  ;;  %vm355_vm0 = vcmask 64512   ;;  %vm395_vm1 = vcmask 1043456   ;;  %vm413_vm2 = vcmask 60416  }
   0xf   : > { %s563_s25 = sshll.u32 %s782_s19, 2  ;;  %s340_s11 = scalar_lea.vmem %s769_s4, %s782_s19 }
  0x10   : > { %s315_s26 = sadd.s32 %s563_s25, %s784_s18  ;;  %s569_s12 = sshll.u32 %s784_s18, 2  ;;  %v616_v5 = vld [vmem:[%s340_s11] ss:$0 sm:$0xff] }
  0x11   : > { %s721_s27 = sshll.u32 %s315_s26, 2  ;;  %s337_s15 = scalar_lea.vmem %s768_s3, %s569_s12 }
  0x12   : > { %s325_s30 = scalar_lea.vmem %s766_s1, %s721_s27  ;;  %s317_s8 = scalar_lea.vmem %s765_s0, %s721_s27  ;;  %v353_v3 = vld [vmem:[%s337_s15] sm:$0xf] }
  0x13   : > { %v351_v0 = vld [vmem:[%s325_s30] sm:$0xf]  ;;  %v354_v4 = vunpack.c.l.bf16 %v353_v3  ;;  %s333_s18 = scalar_lea.vmem %s767_s2, %s721_s27  ;;  %s348_s26 = scalar_lea.vmem %s770_s5, %s721_s27 }
  0x14   : > { %v360_v1 = vsel %vm355_vm0, %v351_v0, 0  ;;  %v350_v2 = vld [vmem:[%s317_s8] sm:$0xf] }
  0x15   : > { %369 = vmatpush.bf16.xpose.msra.mxu0 %v360_v1  ;;  %v352_v16 = vld [vmem:[%s333_s18] sm:$0xf] }
  0x16   : > { %v397_v17 = vsel %vm395_vm1, %v352_v16, 0 }
  0x17   : > { %406 = vmatpush.bf16.msra.mxu1 %v397_v17 }
  0x1c   : > { %572 = vmatmul.msk.bf16.vlgmr.msra.gmra.mxu0 %vm355_vm0, %v350_v2 }
  0x99   : > { %v371_v6 = vpop.f32.mrf.mxu0 }
  0x9a   : > { %v372_v7 = vadd.f32 %v371_v6, %v354_v4 }
  0x9c   : > { %v379_v8 = vadd.f32 %v616_v5, %v372_v7 }
  0x9e   : > { %v380_v9 = vsel %vm355_vm0, %v379_v8, -inf }
  0x9f   : > { %381 = vmax.xlane.f32.xlu0 %v380_v9 }
  0xa1   : > { %v373_v10 = vpop.f32.mrf.mxu0 }
 0x112   : > { %v382_v11 = vpop.xlane.xlu0 %381 }
 0x113   : > { %v383_v12 = vsub.f32 %v379_v8, %v382_v11 }
 0x115   : > { %v384_v13 = vmul.f32 1.442695, %v383_v12 }
 0x117   : > { %617 = vpow2.f32 %v384_v13 }
 0x11d   : > { %v618_v14 = vpop.eup %617 }
 0x11e   : > { %v386_v15 = vsel %vm355_vm0, %v618_v14, 0.0 }
 0x11f   : > { %387 = vadd.xlane.f32.xlu0 %v386_v15 }
 0x192   : > { %v388_v18 = vpop.xlane.xlu0 %387 }
 0x193   : > { %619 = vrcp.f32 %v388_v18 }
 0x199   : > { %v620_v19 = vpop.eup %619 }
 0x19a   : > { %v390_v20 = vmul.f32 %v620_v19, %v618_v14 }
 0x19c   : > { %v391_v21 = vpack.c.bf16 %v390_v20, %v390_v20 }
 0x19e   : > { %573 = vmatmul.msk.bf16.vlgmr.msra.gmra.mxu1 %vm355_vm0, %v391_v21 }
 0x21b   : > { %v408_v22 = vpop.f32.mrf.mxu1 }
 0x21c   : > { %v412_v23 = vpack.c.bf16 %v408_v22, %v408_v22 }
 0x21e   : > { %414 = vst.msk [vmem:[%s348_s26] sm:$0xf] %vm413_vm2, %v412_v23 }
 0x223   : > { %v410_v24 = vpop.f32.mrf.mxu1 }
 0x224 PF: > { %s15_s22 = sadd.s32 1, %s659_s22   ;;  %s771_s18 = smov %s651_s20 }
 0x225   : > { %p12_p7 = scmp.ge.s32.totalorder %s15_s22, 10   ;;  %s772_s19 = smov %s655_s21 }
 0x226   : > { %s773_s20 = smov %s776_s23  ;;  %s774_s21 = smov %s780_s24 }
 0x227   :  { %14 = sbr.rel (!%p12_p7) target bundleno = 3 (0x3), region = 82 }

// kernel: t5_encoder_forward.12
= control target key start
LH: loop header
LB: loop body
LE: loop exit
PB: predicated region body
PF: predicated region fallthrough
CT: control target
= control target key end

     0   :  { %s453_s15 = smov 0   ;;  %s501_s0 = inlined_call_operand.vmem [shape: f32[16,32], index: 0, kind: input, shape index: {}]   ;;  %s502_s1 = inlined_call_operand.vmem [shape: f32[1,32], index: 1, kind: input, shape index: {}]   ;;  %s503_s2 = inlined_call_operand.vmem [shape: bf16[32,64], index: 2, kind: input, shape index: {}]   ;;  %s504_s3 = inlined_call_operand.vmem [shape: bf16[64,32], index: 3, kind: input, shape index: {}]   ;;  %s505_s4 = inlined_call_operand.vmem [shape: f32[16,32], index: 4, kind: output, shape index: {}]  }
   0x1 LB: > { %s364_s16 = sadd.s32 4294967295, %s425_s15   ;;  %p368_p0 = scmp.ge.s32.totalorder %s425_s15, 1  ;;  %s425_s15 = sphi %s453_s15, %s14_s15  }
   0x2   : > { %p161_p1 = scmp.lt.s32.totalorder %s425_s15, 3 }
   0x4   : > { %p162_p2 = pnand %p368_p0, %p161_p1 }
   0x5   : > { %p185_p3 = scmp.lt.s32.totalorder (!%p162_p2), %s364_s16, 1 }
   0x6   : > { %165 = sbr.rel (%p162_p2) target bundleno = 426 (0x1aa), region = 36 }
   0xb   : > { %s507_s16 = smov (!%p185_p3, %s364_s16), 1  ;;  %vm196_vm0 = vcmask 261120   ;;  %v427_v3 = vmov 32.0   ;;  %v400_v7 = vld [vmem:[%s503_s2 + $0x8] sm:$0xff]  ;;  %v399_v9 = vld [vmem:[%s503_s2] sm:$0xff]  ;;  %v404_v11 = vld [vmem:[%s504_s3 + $0x18] sm:$0xff] }
   0xc   : > { %s369_s17 = sshll.u32 %s507_s16, 3  ;;  %415 = vrcp.f32 %v427_v3  ;;  %251 = vmatpush.bf16.msra.mxu0 %v400_v7  ;;  %300 = vmatpush.bf16.msra.mxu1 %v404_v11  ;;  %v403_v13 = vld [vmem:[%s504_s3 + $0x10] sm:$0xff]  ;;  %v402_v17 = vld [vmem:[%s504_s3 + $0x8] sm:$0xff]  ;;  %v414_v24 = vld [vmem:[%s502_s1] ss:$0 sm:$0xff]  ;;  %vm292_vm5 = vcmask 523264  }
   0xd   : > { %s188_s20 = scalar_lea.vmem %s501_s0, %s369_s17  ;;  %v401_v29 = vld [vmem:[%s504_s3] sm:$0xff]  ;;  %s192_s11 = scalar_lea.vmem %s505_s4, %s369_s17 }
   0xe   : > { %v194_v0 = vld [vmem:[%s188_s20] sm:$0xff] }
   0xf   : > { %v195_v1 = vmul.f32 %v194_v0, %v194_v0 }
  0x10   : > { %252 = vmatpush.bf16.msra.mxu0 %v399_v9  ;;  %301 = vmatpush.bf16.msra.mxu1 %v403_v13 }
  0x11   : > { %v197_v2 = vsel %vm196_vm0, %v195_v1, 0.0 }
  0x12   : > { %198 = vadd.xlane.f32.xlu0 %v197_v2  ;;  %v416_v4 = vpop.eup %415 }
  0x13   : > { %v201_v5 = vmul.f32 32.0, %v416_v4  ;;  %vm205_vm1 = vweird.f32 %v416_v4 }
  0x14   : > { %302 = vmatpush.bf16.msra.mxu1 %v402_v17 }
  0x15   : > { %v202_v6 = vsub.f32 1.0, %v201_v5 }
  0x17   : > { %v203_v8 = vmul.f32 %v416_v4, %v202_v6 }
  0x18   : > { %303 = vmatpush.bf16.msra.mxu1 %v401_v29 }
  0x19   : > { %v204_v10 = vadd.f32 %v416_v4, %v203_v8 }
  0x1b   : > { %v206_v12 = vsel %vm205_vm1, %v416_v4, %v204_v10 }
  0x85   : > { %v199_v14 = vpop.xlane.xlu0 %198 }
  0x86   : > { %v207_v15 = vmul.f32 %v206_v12, %v199_v14 }
  0x88   : > { %v208_v16 = vadd.f32 1e-06, %v207_v15 }
  0x8a   : > { %417 = vrsqrt.f32 %v208_v16  ;;  %vm215_vm3 = vweird.f32 %v208_v16 }
  0x90   : > { %v418_v18 = vpop.eup %417 }
  0x91   : > { %v210_v19 = vmul.f32 %v418_v18, %v208_v16  ;;  %vm216_vm2 = vweird.f32 %v418_v18 }
  0x92   : > { %vm217_vm4 = vmor %vm215_vm3, %vm216_vm2 }
  0x93   : > { %v211_v20 = vmul.f32 %v418_v18, %v210_v19 }
  0x95   : > { %v212_v21 = vmul.f32 0.5, %v211_v20 }
  0x97   : > { %v213_v22 = vsub.f32 1.5, %v212_v21 }
  0x99   : > { %v214_v23 = vmul.f32 %v418_v18, %v213_v22 }
  0x9b   : > { %v218_v25 = vsel %vm217_vm4, %v418_v18, %v214_v23 }
  0x9c   : > { %v219_v26 = vmul.f32 %v218_v25, %v194_v0 }
  0x9e   : > { %v224_v27 = vmul.f32 %v414_v24, %v219_v26 }
  0xa0   : > { %v225_v28 = vpack.c.bf16 %v224_v27, %v224_v27 }
  0xa2   : > { %379 = vmatmul.msk.bf16.vlgmr.msra.gmra.mxu0 %vm196_vm0, %v225_v28 }
 0x11f   : > { %v254_v30 = vpop.f32.mrf.mxu0 }
 0x120   : > { %v258_v31 = vmax.f32 %v254_v30, 0.0 }
 0x122   : > { %v259_v32 = vpack.c.bf16 %v258_v31, %v258_v31 }
 0x124   : > { %396 = vmatmul.msk.bf16.vlgmr.msra.gmra.mxu1 %vm292_vm5, %v259_v32 }
 0x127   : > { %v256_v33 = vpop.f32.mrf.mxu0 }
 0x1a1   : > { %v305_v34 = vpop.f32.mrf.mxu1 }
 0x1a2   : > { %v309_v35 = vadd.f32 %v305_v34, %v194_v0 }
 0x1a4   : > { %310 = vst.msk [vmem:[%s192_s11] sm:$0xff] %vm196_vm0, %v309_v35 }
 0x1a9   : > { %v307_v36 = vpop.f32.mrf.mxu1 }
 0x1aa PF: > { %s14_s15 = sadd.s32 1, %s425_s15  }
 0x1ab   : > { %p11_p4 = scmp.ge.s32.totalorder %s14_s15, 4  }
 0x1ad   :  { %13 = sbr.rel (!%p11_p4) target bundleno = 1 (0x1), region = 66 }

</bundles_post_ra>
